<compile_context>
chip_gen: v7x
topology: tpu7x:2x2x1
jax: 0.10.0
libtpu: 0.0.40
codegen_flags: <defaults>
</compile_context>

<pallas_src>
import jax
import jax.numpy as jnp
import numpy as np
from jax.experimental import pallas as pl
from jax.experimental.pallas import tpu as pltpu

_LANE = 128
_SUBLANE = 8
_MAX_LANE_BLOCK = 1024              # 512-1024 lanes ~ HBM roofline sweet spot
_BLOCK_BYTES_TARGET = 1 << 20       # ~1 MiB per (rows, lanes) block
_VMEM_LIMIT_BYTES = 32 * 1024 * 1024


def _round_up(n, m):
    return (n + m - 1) // m * m


def _pick_tiles(n_rows, n_lanes, itemsize):
    """Pick (row_block, lane_block): sublane/lane aligned, ~1 MiB per block so
    the pipelined working set (2x in + 2x out) stays well under scoped VMEM on
    every TPU generation."""
    lane_blk = min(_round_up(n_lanes, _LANE), _MAX_LANE_BLOCK)
    rows_by_budget = max(_SUBLANE, _BLOCK_BYTES_TARGET // (lane_blk * itemsize))
    row_blk = min(_round_up(n_rows, _SUBLANE), _round_up(rows_by_budget, _SUBLANE))
    return row_blk, lane_blk


# --------------------------- pass 1: spatial sum ----------------------------

def _squeeze_sum_kernel(x_ref, o_ref):
    # Accumulate the spatial (lane-axis) sum for each (b, c) row in f32.
    # The reduction runs on the otherwise-idle MXU (x @ ones-column) so the
    # mem-bound stream spends no XLU/VPU slots on a cross-lane reduce, and
    # there is no f32 materialization of the x block.
    @pl.when(pl.program_id(1) == 0)
    def _init():
        o_ref[...] = jnp.zeros_like(o_ref)

    ones = jnp.ones((x_ref.shape[1], 1), dtype=x_ref.dtype)
    o_ref[...] += jnp.dot(x_ref[...], ones, preferred_element_type=jnp.float32)


# --------------------------- pass 2: apply -----------------------------------

def _apply_kernel(x_ref, scale_ref, bias_ref, o_ref):
    # out = x * scale + bias in x's native dtype; scale/bias are (rows, 1)
    # blocks broadcast across the lane axis.
    o_ref[...] = x_ref[...] * scale_ref[...] + bias_ref[...]


@jax.jit
def se_block_pallas(x, m, w1, b1, w2, b2):
    """x: (B, C, H, W) NCHW, m: (B, M).  PyTorch nn.Linear conventions:
    w1: (hidden, C+M), b1: (hidden,), w2: (2*C, hidden), b2: (2*C,)."""
    B, C, H, W = x.shape
    R = B * C
    HW = H * W
    itemsize = jnp.dtype(x.dtype).itemsize

    row_blk, lane_blk = _pick_tiles(R, HW, itemsize)
    Rp = _round_up(R, row_blk)
    HWp = _round_up(HW, lane_blk)
    grid = (Rp // row_blk, HWp // lane_blk)

    x2d = x.reshape(R, HW)
    if Rp != R or HWp != HW:
        # Zero padding: padded lanes contribute 0 to the sum; padded rows are
        # sliced off at the end.
        x2d = jnp.pad(x2d, ((0, Rp - R), (0, HWp - HW)))

    # ---- pass 1: spatial sums (f32 accumulation) ----------------------------
    sums = pl.pallas_call(
        _squeeze_sum_kernel,
        out_shape=jax.ShapeDtypeStruct((Rp, 1), jnp.float32),
        grid=grid,
        in_specs=[pl.BlockSpec((row_blk, lane_blk), lambda i, j: (i, j))],
        out_specs=pl.BlockSpec((row_blk, 1), lambda i, j: (i, 0)),
        compiler_params=pltpu.CompilerParams(
            dimension_semantics=("parallel", "arbitrary"),
            vmem_limit_bytes=_VMEM_LIMIT_BYTES),
    )(x2d)

    # ---- tiny excite MLP in plain XLA (negligible work, kept in f32) --------
    sq = sums[:R, 0].reshape(B, C) / float(HW)            # adaptive avg pool 1x1
    z = jnp.concatenate([sq, m.astype(jnp.float32)], axis=1)
    h = jax.nn.relu(z @ w1.astype(jnp.float32).T + b1.astype(jnp.float32))
    e = h @ w2.astype(jnp.float32).T + b2.astype(jnp.float32)
    scale = jax.nn.sigmoid(e[:, :C]).astype(x.dtype).reshape(R, 1)
    bias = e[:, C:].astype(x.dtype).reshape(R, 1)
    if Rp != R:
        scale = jnp.pad(scale, ((0, Rp - R), (0, 0)))
        bias = jnp.pad(bias, ((0, Rp - R), (0, 0)))

    # ---- pass 2: out = x * scale + bias (x aliased with the output) ---------
    out2d = pl.pallas_call(
        _apply_kernel,
        out_shape=jax.ShapeDtypeStruct((Rp, HWp), x.dtype),
        grid=grid,
        in_specs=[pl.BlockSpec((row_blk, lane_blk), lambda i, j: (i, j)),
                  pl.BlockSpec((row_blk, 1), lambda i, j: (i, 0)),
                  pl.BlockSpec((row_blk, 1), lambda i, j: (i, 0))],
        out_specs=pl.BlockSpec((row_blk, lane_blk), lambda i, j: (i, j)),
        input_output_aliases={0: 0},
        compiler_params=pltpu.CompilerParams(
            dimension_semantics=("parallel", "parallel"),
            vmem_limit_bytes=_VMEM_LIMIT_BYTES),
    )(x2d, scale, bias)

    return out2d[:R, :HW].reshape(B, C, H, W)


def se_block_reference(x, m, w1, b1, w2, b2):
    """Pure-JAX reference of the PyTorch forward (for validation)."""
    B, C, H, W = x.shape
    sq = jnp.mean(x, axis=(2, 3))                          # (B, C)
    z = jnp.concatenate([sq, m], axis=1)                   # (B, C+M)
    h = jax.nn.relu(z @ w1.T + b1)                         # (B, hidden)
    e = h @ w2.T + b2                                      # (B, 2C)
    scale = jax.nn.sigmoid(e[:, :C])[:, :, None, None]
    bias = e[:, C:][:, :, None, None]
    return x * scale + bias


if __name__ == "__main__":
    # Small shapes consistent with the module:
    #   x: (B, C, H, W), m: (B, M)
    #   num_features_input  = C + M
    #   num_features_output = C
    B, C, H, W = 2, 4, 16, 16
    M = 4
    reduction_factor = 4
    n_in = C + M                       # 8
    hidden = n_in // reduction_factor  # 2
    n_out2 = 2 * C                     # 8

    key = jax.random.PRNGKey(0)
    kx, km, kw1, kb1, kw2, kb2 = jax.random.split(key, 6)

    x = jax.random.normal(kx, (B, C, H, W), dtype=jnp.float32)
    m = jax.random.normal(km, (B, M), dtype=jnp.float32)

    # Deterministic synthetic parameters (PyTorch nn.Linear shapes: (out, in)).
    w1 = jax.random.normal(kw1, (hidden, n_in), dtype=jnp.float32) * 0.3
    b1 = jax.random.normal(kb1, (hidden,), dtype=jnp.float32) * 0.1
    w2 = jax.random.normal(kw2, (n_out2, hidden), dtype=jnp.float32) * 0.3
    b2 = jax.random.normal(kb2, (n_out2,), dtype=jnp.float32) * 0.1

    out = se_block_pallas(x, m, w1, b1, w2, b2)
    out = jax.block_until_ready(out)

    ref = jax.block_until_ready(se_block_reference(x, m, w1, b1, w2, b2))
    np.testing.assert_allclose(np.asarray(out), np.asarray(ref), rtol=1e-5, atol=1e-5)

    print("KERNEL_OK")
</pallas_src>

<mosaic_0001>
module attributes {stable_mosaic.version = 11 : i64} {
  func.func @_squeeze_sum_kernel(%arg0: i32, %arg1: i32, %arg2: memref<8x256xf32, #tpu.memory_space<vmem>>, %arg3: memref<8x1xf32, #tpu.memory_space<vmem>>) attributes {dimension_semantics = [#tpu.dimension_semantics<parallel>, #tpu.dimension_semantics<arbitrary>], iteration_bounds = array<i64: 1, 1>, scalar_prefetch = 0 : i64, scratch_operands = 0 : i64, tpu.core_type = #tpu.core_type<tc>, window_params = [{transform_indices = @transform_0, window_bounds = array<i64: 8, 256>}, {transform_indices = @transform_1, window_bounds = array<i64: 8, 1>}]} {
    %c0_i32 = arith.constant 0 : i32
    %0 = arith.cmpi eq, %arg1, %c0_i32 : i32
    %1 = arith.extui %0 : i1 to i32
    %c0_i32_0 = arith.constant 0 : i32
    %2 = arith.cmpi ne, %1, %c0_i32_0 : i32
    scf.if %2 {
      %cst_7 = arith.constant 0.000000e+00 : f32
      %9 = vector.broadcast %cst_7 : f32 to vector<8x1xf32>
      %c0_8 = arith.constant 0 : index
      %c0_9 = arith.constant 0 : index
      %10 = vector.load %arg3[%c0_8, %c0_9] : memref<8x1xf32, #tpu.memory_space<vmem>>, vector<8x1xf32>
      tpu.vector_store %arg3[%c0_8, %c0_9], %9 {strides = array<i32>} : memref<8x1xf32, #tpu.memory_space<vmem>>, vector<8x1xf32>,
    } else {
    }
    %cst = arith.constant 1.000000e+00 : f32
    %3 = vector.broadcast %cst : f32 to vector<256x1xf32>
    %c0 = arith.constant 0 : index
    %c0_1 = arith.constant 0 : index
    %4 = vector.load %arg3[%c0, %c0_1] : memref<8x1xf32, #tpu.memory_space<vmem>>, vector<8x1xf32>
    %c0_2 = arith.constant 0 : index
    %c0_3 = arith.constant 0 : index
    %5 = vector.load %arg2[%c0_2, %c0_3] : memref<8x256xf32, #tpu.memory_space<vmem>>, vector<8x256xf32>
    %cst_4 = arith.constant dense<0.000000e+00> : vector<8x1xf32>
    %6 = tpu.matmul %5, %3, %cst_4 {dimension_numbers = #tpu.dot_dimension_numbers<[1], [0], [0], [1], [0, 0, 1, 1], [], []>} : vector<8x256xf32>, vector<256x1xf32>, vector<8x1xf32> -> vector<8x1xf32>
    %7 = arith.addf %4, %6 : vector<8x1xf32>
    %c0_5 = arith.constant 0 : index
    %c0_6 = arith.constant 0 : index
    %8 = vector.load %arg3[%c0_5, %c0_6] : memref<8x1xf32, #tpu.memory_space<vmem>>, vector<8x1xf32>
    tpu.vector_store %arg3[%c0_5, %c0_6], %7 {strides = array<i32>} : memref<8x1xf32, #tpu.memory_space<vmem>>, vector<8x1xf32>,
    return
  }
  func.func @transform_0(%arg0: i32, %arg1: i32) -> (i32, i32) {
    %c0_i32 = arith.constant 0 : i32
    return %arg0, %arg1 : i32, i32
  }
  func.func @transform_1(%arg0: i32, %arg1: i32) -> (i32, i32) {
    %c0_i32 = arith.constant 0 : i32
    %c0_i32_0 = arith.constant 0 : i32
    return %arg0, %c0_i32 : i32, i32
  }
}

module attributes {stable_mosaic.version = 11 : i64} {
  func.func @_apply_kernel(%arg0: i32, %arg1: i32, %arg2: memref<8x256xf32, #tpu.memory_space<vmem>>, %arg3: memref<8x1xf32, #tpu.memory_space<vmem>>, %arg4: memref<8x1xf32, #tpu.memory_space<vmem>>, %arg5: memref<8x256xf32, #tpu.memory_space<vmem>>) attributes {dimension_semantics = [#tpu.dimension_semantics<parallel>, #tpu.dimension_semantics<parallel>], iteration_bounds = array<i64: 1, 1>, scalar_prefetch = 0 : i64, scratch_operands = 0 : i64, tpu.core_type = #tpu.core_type<tc>, window_params = [{transform_indices = @transform_0, window_bounds = array<i64: 8, 256>}, {transform_indices = @transform_1, window_bounds = array<i64: 8, 1>}, {transform_indices = @transform_2, window_bounds = array<i64: 8, 1>}, {transform_indices = @transform_3, window_bounds = array<i64: 8, 256>}]} {
    %c0 = arith.constant 0 : index
    %c0_0 = arith.constant 0 : index
    %0 = vector.load %arg2[%c0, %c0_0] : memref<8x256xf32, #tpu.memory_space<vmem>>, vector<8x256xf32>
    %c0_1 = arith.constant 0 : index
    %c0_2 = arith.constant 0 : index
    %1 = vector.load %arg3[%c0_1, %c0_2] : memref<8x1xf32, #tpu.memory_space<vmem>>, vector<8x1xf32>
    %2 = vector.broadcast %1 : vector<8x1xf32> to vector<8x256xf32>
    %3 = arith.mulf %0, %2 : vector<8x256xf32>
    %c0_3 = arith.constant 0 : index
    %c0_4 = arith.constant 0 : index
    %4 = vector.load %arg4[%c0_3, %c0_4] : memref<8x1xf32, #tpu.memory_space<vmem>>, vector<8x1xf32>
    %5 = vector.broadcast %4 : vector<8x1xf32> to vector<8x256xf32>
    %6 = arith.addf %3, %5 : vector<8x256xf32>
    %c0_5 = arith.constant 0 : index
    %c0_6 = arith.constant 0 : index
    %7 = vector.load %arg5[%c0_5, %c0_6] : memref<8x256xf32, #tpu.memory_space<vmem>>, vector<8x256xf32>
    tpu.vector_store %arg5[%c0_5, %c0_6], %6 {strides = array<i32>} : memref<8x256xf32, #tpu.memory_space<vmem>>, vector<8x256xf32>,
    return
  }
  func.func @transform_0(%arg0: i32, %arg1: i32) -> (i32, i32) {
    %c0_i32 = arith.constant 0 : i32
    return %arg0, %arg1 : i32, i32
  }
  func.func @transform_1(%arg0: i32, %arg1: i32) -> (i32, i32) {
    %c0_i32 = arith.constant 0 : i32
    %c0_i32_0 = arith.constant 0 : i32
    return %arg0, %c0_i32 : i32, i32
  }
  func.func @transform_2(%arg0: i32, %arg1: i32) -> (i32, i32) {
    %c0_i32 = arith.constant 0 : i32
    %c0_i32_0 = arith.constant 0 : i32
    return %arg0, %c0_i32 : i32, i32
  }
  func.func @transform_3(%arg0: i32, %arg1: i32) -> (i32, i32) {
    %c0_i32 = arith.constant 0 : i32
    return %arg0, %arg1 : i32, i32
  }
}

</mosaic_0001>

<bundles_post_ra>
// kernel: se_block_pallas.2
= control target key start
LH: loop header
LB: loop body
LE: loop exit
PB: predicated region body
PF: predicated region fallthrough
CT: control target
= control target key end

     0   :  { %v147_v0 = vmov 1.0|1.0   ;;  %vm12_vm0 = vcmask 7168   ;;  %v148_v3 = vmov 0.0   ;;  %s174_s0 = inlined_call_operand.vmem [shape: f32[8,256], index: 0, kind: input, shape index: {}]   ;;  %s175_s1 = inlined_call_operand.vmem [shape: f32[8,1], index: 1, kind: output, shape index: {}]  }
   0x1   :  { %129 = vmatprep.subr.bf16.mxu0 %v147_v0  ;;  %v16_v1 = vld [vmem:[%s174_s0 + $0x8] sm:$0xff]  ;;  %v15_v2 = vld [vmem:[%s174_s0] sm:$0xff]  ;;  %13 = vst.msk [vmem:[%s175_s1] sm:$0xff] %vm12_vm0, %v148_v3 }
   0x2   :  { %130 = vmatpush3.bf16.msra.mxu0 %v147_v0  ;;  %81 = vmatprep.mubr.f32.mxu0 %v16_v1 }
   0x3   :  { %131 = vmatprep.subr.bf16.mxu0 %v147_v0 }
   0x6   :  { %132 = vmatpush3.bf16.msra.mxu0 %v147_v0 }
   0x7   :  { %133 = vmatprep.subr.bf16.mxu0 %v147_v0 }
   0x8   :  { %v14_v5 = vld [vmem:[%s175_s1] sm:$0xff] }
   0xa   :  { %134 = vmatpush3.bf16.msra.mxu0 %v147_v0 }
   0xb   :  { %135 = vmatprep.subr.bf16.mxu0 %v147_v0 }
   0xe   :  { %136 = vmatpush3.bf16.msra.mxu0 %v147_v0 }
   0xf   :  { %137 = vmatprep.subr.bf16.mxu0 %v147_v0 }
  0x12   :  { %138 = vmatpush3.bf16.msra.mxu0 %v147_v0 }
  0x13   :  { %139 = vmatprep.subr.bf16.mxu0 %v147_v0 }
  0x16   :  { %140 = vmatpush3.bf16.msra.mxu0 %v147_v0 }
  0x17   :  { %141 = vmatprep.subr.bf16.mxu0 %v147_v0 }
  0x1a   :  { %142 = vmatpush3.bf16.msra.mxu0 %v147_v0 }
  0x1b   :  { %143 = vmatprep.subr.bf16.mxu0 %v147_v0 }
  0x1e   :  { %144 = vmatpush3.bf16.msra.mxu0 %v147_v0 }
  0x21   :  { %82 = vmatmul.mubr.f32.vlgmr.msra.gmra.mrb[0].mxu0 %v15_v2 }
  0xf4   :  { %v126_v4 = vpop.f32.mrb[0].mxu0 }
  0xf5   :  { %v127_v6 = vpop.f32.mrb[1].mxu0 }
  0xf6   :  { %v128_v7 = vadd.f32 %v127_v6, %v126_v4 }
  0xf8   :  { %v87_v8 = vadd.f32 %v128_v7, %v14_v5 }
  0xfa   :  { %89 = vst.msk [vmem:[%s175_s1] sm:$0xff] %vm12_vm0, %v87_v8 }

// kernel: se_block_pallas.3
= control target key start
LH: loop header
LB: loop body
LE: loop exit
PB: predicated region body
PF: predicated region fallthrough
CT: control target
= control target key end

     0   :  { %v40_v0 = vmov 0   ;;  %s79_s1 = inlined_call_operand.vmem [shape: f32[8,1], index: 1, kind: input, shape index: {}]   ;;  %s80_s2 = inlined_call_operand.vmem [shape: f32[8,1], index: 2, kind: input, shape index: {}]   ;;  %s81_s0 = inlined_call_operand.vmem [shape: f32[8,256], index: 0, kind: input, shape index: {}, may-alias: {0,3}]   ;;  %s82_s3 = inlined_call_operand.vmem [shape: f32[8,256], index: 3, kind: output, shape index: {}, may-alias: {0,3}]  }
   0x1   :  { %39 = vset.pattern.permute.xlu0 %v40_v0  ;;  %v16_v1 = vld [vmem:[%s79_s1] sm:$0xff]  ;;  %v15_v5 = vld [vmem:[%s81_s0 + $0x8] sm:$0xff] }
   0x2   :  { %19 = vperm.xlu0 %39, %v16_v1   ;;  %v24_v2 = vld [vmem:[%s80_s2] sm:$0xff] }
   0x3   :  { %v14_v4 = vld [vmem:[%s81_s0] sm:$0xff] }
   0x6   :  { %27 = vperm.xlu0 %39, %v24_v2  }
  0x81   :  { %v20_v3 = vpop.permute.xlu0 %19 }
  0x82   :  { %v22_v6 = vmul.f32 %v20_v3, %v14_v4  ;;  %v23_v7 = vmul.f32 %v20_v3, %v15_v5 }
  0x85   :  { %v28_v8 = vpop.permute.xlu0 %27 }
  0x86   :  { %v30_v9 = vadd.f32 %v28_v8, %v22_v6  ;;  %v31_v10 = vadd.f32 %v28_v8, %v23_v7 }
  0x88   :  { %32 = vst [vmem:[%s82_s3] sm:$0xff] %v30_v9  ;;  %33 = vst [vmem:[%s82_s3 + $0x8] sm:$0xff] %v31_v10 }

</bundles_post_ra>
